<compile_context>
chip_gen: v7x
topology: tpu7x:2x2x1
jax: 0.10.0
libtpu: 0.0.40
codegen_flags: <defaults>
</compile_context>

<pallas_src>
import functools
import math

import jax
import jax.numpy as jnp
from jax.experimental import pallas as pl
from jax.experimental.pallas import tpu as pltpu

_EPS = 1e-12  # torch.nn.functional.normalize default eps


# ----------------------------------------------------------------------------
# Kernels
# ----------------------------------------------------------------------------
def _l2norm_sublane_kernel(x_ref, o_ref):
    # Tile: (lead_tile, C, lane_tile). Reduce over C (sublane axis); lanes carry
    # the flattened trailing (spatial) positions.
    xf = x_ref[...].astype(jnp.float32)
    sq = jnp.sum(xf * xf, axis=-2, keepdims=True)                # (lead_tile, 1, lane_tile)
    inv = jax.lax.rsqrt(jnp.maximum(sq, _EPS * _EPS))            # == 1 / max(||x||, eps)
    # Apply the scale in the input dtype (no full-tile f32 copy for bf16/f16).
    o_ref[...] = (x_ref[...] * inv.astype(o_ref.dtype)).astype(o_ref.dtype)


def _l2norm_lane_kernel(x_ref, o_ref):
    # Tile: (row_tile, C). Normalized axis sits on lanes; reduce along lanes.
    xf = x_ref[...].astype(jnp.float32)
    sq = jnp.sum(xf * xf, axis=-1, keepdims=True)                # (row_tile, 1)
    inv = jax.lax.rsqrt(jnp.maximum(sq, _EPS * _EPS))
    o_ref[...] = (x_ref[...] * inv.astype(o_ref.dtype)).astype(o_ref.dtype)


def _sumsq_kernel(x_ref, inv_ref, acc_ref, *, n_chan, c_tile):
    # Pass 1 of the very-large-C fallback: accumulate sum(x^2) over C blocks.
    k = pl.program_id(2)

    @pl.when(k == 0)
    def _():
        acc_ref[...] = jnp.zeros_like(acc_ref)

    x = x_ref[...].astype(jnp.float32)                           # (1, c_tile, lane_tile)
    # Mask channel-tail padding so garbage rows never enter the sum.
    ch = jax.lax.broadcasted_iota(jnp.int32, x.shape, 1) + k * c_tile
    x = jnp.where(ch < n_chan, x, 0.0)
    acc_ref[...] += jnp.sum(x * x, axis=1, keepdims=True)

    @pl.when(k == pl.num_programs(2) - 1)
    def _():
        inv_ref[...] = jax.lax.rsqrt(jnp.maximum(acc_ref[...], _EPS * _EPS))


def _scale_kernel(x_ref, inv_ref, o_ref):
    # Pass 2 of the very-large-C fallback: y = x * inv_norm.
    o_ref[...] = (x_ref[...] * inv_ref[...].astype(o_ref.dtype)).astype(o_ref.dtype)


# ----------------------------------------------------------------------------
# pallas_call wrappers
# ----------------------------------------------------------------------------
def _vmem_budgets():
    """(per-step tile budget, vmem_limit_bytes) for the current TPU generation."""
    try:
        phys = int(pltpu.get_tpu_info().vmem_capacity_bytes)
    except Exception:
        phys = 64 * 1024 * 1024                      # conservative (v7x-sized) fallback
    # v7x (64 MiB physical) -> 32 MiB limit; v5e/v6e (128 MiB) -> 64 MiB limit.
    vmem_limit = int(min(phys // 2, 64 * 1024 * 1024))
    tile_budget = vmem_limit // 2                    # headroom for compiler intermediates
    return tile_budget, vmem_limit


def _l2norm_fused(x3, lead_tile, lane_tile, vmem_limit):
    lead, C, trail = x3.shape
    itemsize = jnp.dtype(x3.dtype).itemsize
    total = lead * C * trail
    cost = pl.CostEstimate(flops=3 * total, transcendentals=lead * trail,
                           bytes_accessed=2 * total * itemsize)
    return pl.pallas_call(
        _l2norm_sublane_kernel,
        out_shape=jax.ShapeDtypeStruct((lead, C, trail), x3.dtype),
        grid=(pl.cdiv(lead, lead_tile), pl.cdiv(trail, lane_tile)),
        in_specs=[pl.BlockSpec((lead_tile, C, lane_tile), lambda i, j: (i, 0, j))],
        out_specs=pl.BlockSpec((lead_tile, C, lane_tile), lambda i, j: (i, 0, j)),
        compiler_params=pltpu.CompilerParams(
            dimension_semantics=("parallel", "parallel"),
            vmem_limit_bytes=vmem_limit),
        cost_estimate=cost,
    )(x3)


def _l2norm_lane(x2, row_tile, vmem_limit):
    lead, C = x2.shape
    itemsize = jnp.dtype(x2.dtype).itemsize
    total = lead * C
    cost = pl.CostEstimate(flops=3 * total, transcendentals=lead,
                           bytes_accessed=2 * total * itemsize)
    return pl.pallas_call(
        _l2norm_lane_kernel,
        out_shape=jax.ShapeDtypeStruct((lead, C), x2.dtype),
        grid=(pl.cdiv(lead, row_tile),),
        in_specs=[pl.BlockSpec((row_tile, C), lambda i: (i, 0))],
        out_specs=pl.BlockSpec((row_tile, C), lambda i: (i, 0)),
        compiler_params=pltpu.CompilerParams(
            dimension_semantics=("parallel",),
            vmem_limit_bytes=vmem_limit),
        cost_estimate=cost,
    )(x2)


def _l2norm_two_pass(x3, lane_tile, c_tile, vmem_limit):
    """Fallback for very large C: norm reduction over C blocks, then scale."""
    lead, C, trail = x3.shape
    grid = (lead, pl.cdiv(trail, lane_tile), pl.cdiv(C, c_tile))

    inv = pl.pallas_call(
        functools.partial(_sumsq_kernel, n_chan=C, c_tile=c_tile),
        out_shape=jax.ShapeDtypeStruct((lead, 1, trail), jnp.float32),
        grid=grid,
        in_specs=[pl.BlockSpec((1, c_tile, lane_tile), lambda b, j, k: (b, k, j))],
        out_specs=pl.BlockSpec((1, 1, lane_tile), lambda b, j, k: (b, 0, j)),
        scratch_shapes=[pltpu.VMEM((1, 1, lane_tile), jnp.float32)],
        compiler_params=pltpu.CompilerParams(
            dimension_semantics=("parallel", "parallel", "arbitrary"),
            vmem_limit_bytes=vmem_limit),
    )(x3)

    return pl.pallas_call(
        _scale_kernel,
        out_shape=jax.ShapeDtypeStruct((lead, C, trail), x3.dtype),
        grid=grid,
        in_specs=[pl.BlockSpec((1, c_tile, lane_tile), lambda b, j, k: (b, k, j)),
                  pl.BlockSpec((1, 1, lane_tile), lambda b, j, k: (b, 0, j))],
        out_specs=pl.BlockSpec((1, c_tile, lane_tile), lambda b, j, k: (b, k, j)),
        compiler_params=pltpu.CompilerParams(
            dimension_semantics=("parallel", "parallel", "parallel"),
            vmem_limit_bytes=vmem_limit),
    )(x3, inv)


# ----------------------------------------------------------------------------
# Public entry point (matches F.normalize(x, p=2, dim=dim))
# ----------------------------------------------------------------------------
@functools.partial(jax.jit, static_argnames=("dim",))
def l2_normalize(x, dim=1):
    nd = x.ndim
    dim = dim % nd
    shape = x.shape

    lead = int(math.prod(shape[:dim]))
    C = int(shape[dim])
    trail = int(math.prod(shape[dim + 1:]))

    itemsize = jnp.dtype(x.dtype).itemsize
    tile_budget, vmem_limit = _vmem_budgets()
    # Per-element VMEM cost of one logical tile: double-buffered input + output
    # plus (roughly) one f32 intermediate for the sum-of-squares.
    per_elem = 4 * itemsize + 4

    if trail == 1:
        # Normalized axis is innermost: put it on lanes, reduce along lanes.
        # TODO(synk): astronomically large C (a single (8, C) tile exceeding VMEM)
        # would additionally need a C-split two-pass variant on this path.
        x2 = x.reshape(lead, C)
        rows_fit = max(1, tile_budget // (C * per_elem))
        row_cap = max(8, (pl.cdiv(lead, 4) // 8) * 8)   # keep a few grid steps (v7x megacore)
        row_tile = min(rows_fit, row_cap)
        if row_tile >= lead:
            row_tile = lead
        else:
            row_tile = min(lead, max(8, (row_tile // 8) * 8))
        return _l2norm_lane(x2, row_tile, vmem_limit).reshape(shape)

    x3 = x.reshape(lead, C, trail)
    min_lane = min(trail, 128)

    if C * min_lane * per_elem > tile_budget:
        # C too large for even a minimal-width column tile: two-pass fallback.
        lane_tile = trail if trail <= 512 else 512
        c_fit = tile_budget // (lane_tile * per_elem)
        c_tile = min(C, max(8, (c_fit // 8) * 8))
        return _l2norm_two_pass(x3, lane_tile, c_tile, vmem_limit).reshape(shape)

    # Fused single-pass path: size the tile from the budget only (no lane cap).
    lanes_fit = tile_budget // (C * per_elem)
    if lanes_fit >= trail:
        lane_tile = trail
        rows_fit = max(1, tile_budget // (C * trail * per_elem))
        # Block multiple lead rows per step (one large contiguous DMA), but keep
        # >= ~4 grid steps so both v7x TensorCores get work.
        lead_tile = max(1, min(lead, rows_fit, pl.cdiv(lead, 4)))
    else:
        lane_tile = (lanes_fit // 128) * 128        # >= 128 guaranteed by the check above
        lead_tile = 1
    # If everything collapsed to a single grid step for one sample, split its lanes.
    if lead == 1 and lead_tile == 1 and lane_tile == trail and trail >= 512:
        lane_tile = max(128, ((pl.cdiv(trail, 4) + 127) // 128) * 128)

    return _l2norm_fused(x3, lead_tile, lane_tile, vmem_limit).reshape(shape)


# ----------------------------------------------------------------------------
# Self-test
# ----------------------------------------------------------------------------
if __name__ == "__main__":
    key = jax.random.PRNGKey(0)
    k1, k2, k3 = jax.random.split(key, 3)

    def ref_l2(a, axis):
        n = jnp.sqrt(jnp.sum(a.astype(jnp.float32) ** 2, axis=axis, keepdims=True))
        return (a / jnp.maximum(n, _EPS)).astype(a.dtype)

    # NCHW, dim=1 (the module's default): fused sublane-reduce path.
    x = jax.random.normal(k1, (2, 4, 16, 16), dtype=jnp.float32)
    y = jax.block_until_ready(l2_normalize(x, dim=1))
    assert y.shape == x.shape and y.dtype == x.dtype
    assert jnp.allclose(y, ref_l2(x, 1), atol=1e-5, rtol=1e-5)

    # dim = last axis (embedding normalize): lane-reduce fast path.
    xe = jax.random.normal(k2, (6, 40), dtype=jnp.float32)
    ye = jax.block_until_ready(l2_normalize(xe, dim=-1))
    assert jnp.allclose(ye, ref_l2(xe, -1), atol=1e-5, rtol=1e-5)

    # Very-large-C two-pass fallback, exercised directly at a small size.
    xl = jax.random.normal(k3, (2, 20, 160), dtype=jnp.float32)
    yl = jax.block_until_ready(
        _l2norm_two_pass(xl, lane_tile=128, c_tile=8, vmem_limit=32 * 1024 * 1024))
    assert jnp.allclose(yl, ref_l2(xl, 1), atol=1e-5, rtol=1e-5)

    print("KERNEL_OK")
</pallas_src>

<mosaic_0001>
module attributes {stable_mosaic.version = 11 : i64} {
  func.func @_l2norm_sublane_kernel(%arg0: i32, %arg1: i32, %arg2: memref<1x4x256xf32, #tpu.memory_space<vmem>>, %arg3: memref<1x4x256xf32, #tpu.memory_space<vmem>>) attributes {dimension_semantics = [#tpu.dimension_semantics<parallel>, #tpu.dimension_semantics<parallel>], iteration_bounds = array<i64: 2, 1>, scalar_prefetch = 0 : i64, scratch_operands = 0 : i64, tpu.core_type = #tpu.core_type<tc>, window_params = [{transform_indices = @transform_0, window_bounds = array<i64: 1, 4, 256>}, {transform_indices = @transform_1, window_bounds = array<i64: 1, 4, 256>}]} {
    %c0 = arith.constant 0 : index
    %c0_0 = arith.constant 0 : index
    %c0_1 = arith.constant 0 : index
    %0 = vector.load %arg2[%c0, %c0_0, %c0_1] : memref<1x4x256xf32, #tpu.memory_space<vmem>>, vector<1x4x256xf32>
    %1 = arith.mulf %0, %0 : vector<1x4x256xf32>
    %cst = arith.constant dense<0.000000e+00> : vector<1x256xf32>
    %2 = vector.multi_reduction <add>, %1, %cst [1] : vector<1x4x256xf32> to vector<1x256xf32>
    %3 = vector.shape_cast %2 : vector<1x256xf32> to vector<1x1x256xf32>
    %cst_2 = arith.constant 1.000000e-24 : f32
    %4 = vector.broadcast %cst_2 : f32 to vector<1x1x256xf32>
    %5 = arith.maximumf %3, %4 : vector<1x1x256xf32>
    %6 = math.rsqrt %5 : vector<1x1x256xf32>
    %c0_3 = arith.constant 0 : index
    %c0_4 = arith.constant 0 : index
    %c0_5 = arith.constant 0 : index
    %7 = vector.load %arg2[%c0_3, %c0_4, %c0_5] : memref<1x4x256xf32, #tpu.memory_space<vmem>>, vector<1x4x256xf32>
    %8 = vector.broadcast %6 : vector<1x1x256xf32> to vector<1x4x256xf32>
    %9 = arith.mulf %7, %8 : vector<1x4x256xf32>
    %c0_6 = arith.constant 0 : index
    %c0_7 = arith.constant 0 : index
    %c0_8 = arith.constant 0 : index
    %10 = vector.load %arg3[%c0_6, %c0_7, %c0_8] : memref<1x4x256xf32, #tpu.memory_space<vmem>>, vector<1x4x256xf32>
    tpu.vector_store %arg3[%c0_6, %c0_7, %c0_8], %9 {strides = array<i32>} : memref<1x4x256xf32, #tpu.memory_space<vmem>>, vector<1x4x256xf32>,
    return
  }
  func.func @transform_0(%arg0: i32, %arg1: i32) -> (i32, i32, i32) {
    %c0_i32 = arith.constant 0 : i32
    %c0_i32_0 = arith.constant 0 : i32
    return %arg0, %c0_i32, %arg1 : i32, i32, i32
  }
  func.func @transform_1(%arg0: i32, %arg1: i32) -> (i32, i32, i32) {
    %c0_i32 = arith.constant 0 : i32
    %c0_i32_0 = arith.constant 0 : i32
    return %arg0, %c0_i32, %arg1 : i32, i32, i32
  }
}

</mosaic_0001>

<bundles_post_ra>
// kernel: l2_normalize.1
= control target key start
LH: loop header
LB: loop body
LE: loop exit
PB: predicated region body
PF: predicated region fallthrough
CT: control target
= control target key end

     0   :  { %s348_s6 = smov 0   ;;  %s350_s7 = smov 0   ;;  %s384_s0 = inlined_call_operand.vmem [shape: f32[2,4,256], index: 0, kind: input, shape index: {}]   ;;  %s385_s1 = inlined_call_operand.vmem [shape: f32[2,4,256], index: 1, kind: output, shape index: {}]  }
   0x1   :  { %s352_s8 = smov 0  }
   0x2 LB: > { %s23_s9 = sadd.s32 1, %s332_s7  ;;  %p277_p0 = scmp.ge.s32.totalorder %s336_s8, 1  ;;  %s336_s8 = sphi %s352_s8, %s11_s8   ;;  %s332_s7 = sphi %s350_s7, %s387_s7   ;;  %s328_s6 = sphi %s348_s6, %s386_s6  }
   0x3   : > { %p25_p1 = scmp.ge.s32.totalorder %s23_s9, 2  ;;  %p108_p2 = scmp.lt.s32.totalorder %s336_s8, 3 }
   0x5   : > { %s389_s9 = smov (%p25_p1, %s23_s9), 0  ;;  %p109_p3 = pnand %p277_p0, %p108_p2 }
   0x6   : > { %p137_p4 = scmp.lt.s32.totalorder (!%p109_p3), %s328_s6, 1  ;;  %vm161_vm0 = vcmask (!%p109_p3), 1043456  }
   0x7   : > { %112 = sbr.rel (%p109_p3) target bundleno = 53 (0x35), region = 24 }
   0xe   : > { %s391_s6 = smov (!%p137_p4, %s328_s6), 1 }
   0xf   : > { %s284_s10 = sshll.u32 %s391_s6, 3 }
  0x10   : > { %s144_s13 = scalar_lea.vmem %s384_s0, %s284_s10  ;;  %s154_s16 = scalar_lea.vmem %s385_s1, %s284_s10 }
  0x11   : > { %v156_v0 = vld [vmem:[%s144_s13] sm:$0xff] }
  0x12   : > { %v157_v1 = vmul.f32 %v156_v0, %v156_v0 }
  0x14   : > { %v159_v2 = vcombine.high %v157_v1, %v157_v1  ;;  %v162_v3 = vsel %vm161_vm0, %v157_v1, 0.0 }
  0x15   : > { %v163_v4 = vrot.slane %v162_v3, 4 }
  0x16   : > { %v169_v5 = vsel %vm161_vm0, %v159_v2, 0.0 }
  0x17   : > { %v164_v6 = vadd.f32 %v163_v4, %v162_v3  ;;  %v170_v7 = vrot.slane %v169_v5, 4 }
  0x19   : > { %v165_v8 = vrot.slane %v164_v6, 2  ;;  %v171_v9 = vadd.f32 %v170_v7, %v169_v5 }
  0x1b   : > { %v166_v10 = vadd.f32 %v165_v8, %v164_v6  ;;  %v172_v11 = vrot.slane %v171_v9, 2 }
  0x1d   : > { %v167_v12 = vrot.slane %v166_v10, 1  ;;  %v173_v13 = vadd.f32 %v172_v11, %v171_v9 }
  0x1f   : > { %v168_v14 = vadd.f32 %v167_v12, %v166_v10  ;;  %v174_v15 = vrot.slane %v173_v13, 1 }
  0x21   : > { %v175_v16 = vadd.f32 %v174_v15, %v173_v13  ;;  %v176_v17 = vmax.f32 %v168_v14, 1e-24 }
  0x23   : > { %v177_v18 = vmax.f32 %v175_v16, 1e-24  ;;  %310 = vrsqrt.f32 %v176_v17 }
  0x25   : > { %312 = vrsqrt.f32 %v177_v18 }
  0x2d   : > { %v311_v19 = vpop.eup %310 }
  0x2f   : > { %v313_v20 = vpop.eup %312 }
  0x30   : > { %v182_v21 = vcombine.low %v311_v19, %v313_v20 }
  0x32   : > { %v184_v22 = vmul.f32 %v182_v21, %v156_v0 }
  0x34   : > { %185 = vst [vmem:[%s154_s16] sm:$0xff] %v184_v22 }
  0x35 PF: > { %s11_s8 = sadd.s32 1, %s336_s8   ;;  %s386_s6 = smov %s332_s7 }
  0x36   : > { %p8_p5 = scmp.ge.s32.totalorder %s11_s8, 4   ;;  %s387_s7 = smov %s389_s9 }
  0x38   :  { %10 = sbr.rel (!%p8_p5) target bundleno = 2 (0x2), region = 54 }

</bundles_post_ra>
